<compile_context>
chip_gen: v7x
topology: tpu7x:2x2x1
jax: 0.10.0
libtpu: 0.0.40
codegen_flags: <defaults>
</compile_context>

<pallas_src>
import functools

import jax
import jax.numpy as jnp
import numpy as np
from jax.experimental import pallas as pl
from jax.experimental.pallas import tpu as pltpu


def _round_up(x, m):
    return (x + m - 1) // m * m


def _policy_kernel(n_hidden, x_ref, w_in_ref, *rest):
    """rest = (hw_0 .. hw_{n_hidden-1}, w_out_ref, out_ref).

    Weights arrive already column-normalized (done once in the wrapper).
    x_ref is a (TB, state_dim) tile of the stacked [sleft; sright] batch.
    """
    hw_refs = rest[:n_hidden]
    w_out_ref = rest[n_hidden]
    out_ref = rest[n_hidden + 1]

    # Input layer: 0.5 * (x @ w_in)^2
    h = jnp.dot(x_ref[...], w_in_ref[...], preferred_element_type=jnp.float32)
    h = 0.5 * h * h

    # Hidden layers: relu(h @ hw)
    for hw_ref in hw_refs:
        h = jnp.maximum(
            jnp.dot(h, hw_ref[...], preferred_element_type=jnp.float32), 0.0
        )

    # Output projection: (TB, 1)
    out_ref[...] = jnp.dot(h, w_out_ref[...], preferred_element_type=jnp.float32)


def constrained_flux_policy_forward(s, params, *, block_b=512):
    """Returns (mean_left, mean_right, sigma) — the moments of the two Normals.

    TODO(synk): torch.distributions.Normal (sample / log_prob) has no Pallas
    equivalent; callers consume the returned distribution parameters instead.
    """
    B = s.shape[0]
    state_dim = s.shape[1] - 1

    # Fuse the two streams along the batch axis: rows [0, B) = sleft,
    # rows [B, 2B) = sright.  One matmul per layer for both streams.
    x = jnp.concatenate([s[:, :-1], s[:, 1:]], axis=0)  # (2B, state_dim)

    # Column-normalize the weights ONCE per call (identical for every tile).
    w_in = params["w_in"] / jnp.sum(params["w_in"], axis=0, keepdims=True)
    hidden_ws = [hw / jnp.sum(hw, axis=0, keepdims=True) for hw in params["hidden_ws"]]
    w_out = params["w_out"] / jnp.sum(params["w_out"], axis=0, keepdims=True)
    sigma = params["sigma"]

    total = 2 * B
    # Batch tile: multiple of 8 (sublane), capped at block_b; pad rows to a
    # multiple of the tile so the grid divides evenly (padded rows are zeros
    # and their outputs are discarded).
    tb = min(block_b, _round_up(total, 8))
    padded_total = _round_up(total, tb)
    if padded_total != total:
        x = jnp.pad(x, ((0, padded_total - total), (0, 0)))

    grid = (padded_total // tb,)
    weights = (w_in, *hidden_ws, w_out)

    in_specs = [pl.BlockSpec((tb, state_dim), lambda i: (i, 0))]
    for w in weights:
        in_specs.append(pl.BlockSpec(w.shape, lambda i: (0, 0)))  # resident block

    kernel = functools.partial(_policy_kernel, len(hidden_ws))
    means = pl.pallas_call(
        kernel,
        out_shape=jax.ShapeDtypeStruct((padded_total, 1), jnp.float32),
        grid=grid,
        in_specs=in_specs,
        out_specs=pl.BlockSpec((tb, 1), lambda i: (i, 0)),
        compiler_params=pltpu.CompilerParams(
            dimension_semantics=("parallel",),
        ),
    )(x, *weights)

    mean_left = means[:B]
    mean_right = means[B : 2 * B]
    return mean_left, mean_right, sigma


def reference_forward(s, params):
    """Pure-JAX reference mirroring the PyTorch forward exactly."""
    sleft = s[:, :-1]
    sright = s[:, 1:]
    w_in = params["w_in"] / jnp.sum(params["w_in"], axis=0)
    sleft = 0.5 * (sleft @ w_in) ** 2
    sright = 0.5 * (sright @ w_in) ** 2
    for hw in params["hidden_ws"]:
        hw_ = hw / jnp.sum(hw, axis=0)
        sleft = jax.nn.relu(sleft @ hw_)
        sright = jax.nn.relu(sright @ hw_)
    w_out = params["w_out"] / jnp.sum(params["w_out"], axis=0)
    return sleft @ w_out, sright @ w_out, params["sigma"]


def init_params(key, state_dim, hidden_layers):
    """Deterministic analogue of torch.rand parameter init (uniform [0, 1))."""
    keys = jax.random.split(key, len(hidden_layers) + 3)
    w_in = jax.random.uniform(keys[0], (state_dim, hidden_layers[0]), jnp.float32)
    hidden_ws = []
    for i in range(len(hidden_layers) - 1):
        hidden_ws.append(
            jax.random.uniform(
                keys[1 + i], (hidden_layers[i], hidden_layers[i + 1]), jnp.float32
            )
        )
    w_out = jax.random.uniform(keys[-2], (hidden_layers[-1], 1), jnp.float32)
    sigma = jax.random.uniform(keys[-1], (1, 1), jnp.float32) * 30.0
    return {"w_in": w_in, "hidden_ws": hidden_ws, "w_out": w_out, "sigma": sigma}


if __name__ == "__main__":
    state_dim = 8
    hidden_layers = [32, 32]
    batch = 8

    key = jax.random.PRNGKey(0)
    pkey, skey = jax.random.split(key)
    params = init_params(pkey, state_dim, hidden_layers)

    # state has state_dim + 1 columns so that s[:, :-1] / s[:, 1:] are (B, state_dim)
    s = jax.random.uniform(skey, (batch, state_dim + 1), jnp.float32)

    mean_left, mean_right, sigma = constrained_flux_policy_forward(s, params)
    jax.block_until_ready((mean_left, mean_right, sigma))

    ref_left, ref_right, ref_sigma = reference_forward(s, params)
    np.testing.assert_allclose(
        np.asarray(mean_left), np.asarray(ref_left), rtol=1e-5, atol=1e-5
    )
    np.testing.assert_allclose(
        np.asarray(mean_right), np.asarray(ref_right), rtol=1e-5, atol=1e-5
    )

    # Exercise a batch that needs multiple grid steps + padding.
    big_batch = 300
    s_big = jax.random.uniform(jax.random.PRNGKey(1), (big_batch, state_dim + 1),
                               jnp.float32)
    ml, mr, _ = constrained_flux_policy_forward(s_big, params, block_b=128)
    jax.block_until_ready((ml, mr))
    rl, rr, _ = reference_forward(s_big, params)
    np.testing.assert_allclose(np.asarray(ml), np.asarray(rl), rtol=1e-5, atol=1e-5)
    np.testing.assert_allclose(np.asarray(mr), np.asarray(rr), rtol=1e-5, atol=1e-5)

    print("KERNEL_OK")
</pallas_src>

<mosaic_0001>
module attributes {stable_mosaic.version = 11 : i64} {
  func.func @_policy_kernel(%arg0: i32, %arg1: memref<16x8xf32, #tpu.memory_space<vmem>>, %arg2: memref<8x32xf32, #tpu.memory_space<vmem>>, %arg3: memref<32x32xf32, #tpu.memory_space<vmem>>, %arg4: memref<32x1xf32, #tpu.memory_space<vmem>>, %arg5: memref<16x1xf32, #tpu.memory_space<vmem>>) attributes {dimension_semantics = [#tpu.dimension_semantics<parallel>], iteration_bounds = array<i64: 1>, scalar_prefetch = 0 : i64, scratch_operands = 0 : i64, tpu.core_type = #tpu.core_type<tc>, window_params = [{transform_indices = @transform_0, window_bounds = array<i64: 16, 8>}, {pipeline_mode = #tpu.pipeline_mode<synchronous>, transform_indices = @transform_1, window_bounds = array<i64: 8, 32>}, {pipeline_mode = #tpu.pipeline_mode<synchronous>, transform_indices = @transform_2, window_bounds = array<i64: 32, 32>}, {pipeline_mode = #tpu.pipeline_mode<synchronous>, transform_indices = @transform_3, window_bounds = array<i64: 32, 1>}, {transform_indices = @transform_4, window_bounds = array<i64: 16, 1>}]} {
    %c0 = arith.constant 0 : index
    %c0_0 = arith.constant 0 : index
    %0 = vector.load %arg1[%c0, %c0_0] : memref<16x8xf32, #tpu.memory_space<vmem>>, vector<16x8xf32>
    %c0_1 = arith.constant 0 : index
    %c0_2 = arith.constant 0 : index
    %1 = vector.load %arg2[%c0_1, %c0_2] : memref<8x32xf32, #tpu.memory_space<vmem>>, vector<8x32xf32>
    %cst = arith.constant dense<0.000000e+00> : vector<16x32xf32>
    %2 = tpu.matmul %0, %1, %cst {dimension_numbers = #tpu.dot_dimension_numbers<[1], [0], [0], [1], [0, 0, 1, 1], [], []>} : vector<16x8xf32>, vector<8x32xf32>, vector<16x32xf32> -> vector<16x32xf32>
    %cst_3 = arith.constant 5.000000e-01 : f32
    %3 = vector.broadcast %cst_3 : f32 to vector<16x32xf32>
    %4 = arith.mulf %3, %2 : vector<16x32xf32>
    %5 = arith.mulf %4, %2 : vector<16x32xf32>
    %c0_4 = arith.constant 0 : index
    %c0_5 = arith.constant 0 : index
    %6 = vector.load %arg3[%c0_4, %c0_5] : memref<32x32xf32, #tpu.memory_space<vmem>>, vector<32x32xf32>
    %cst_6 = arith.constant dense<0.000000e+00> : vector<16x32xf32>
    %7 = tpu.matmul %5, %6, %cst_6 {dimension_numbers = #tpu.dot_dimension_numbers<[1], [0], [0], [1], [0, 0, 1, 1], [], []>} : vector<16x32xf32>, vector<32x32xf32>, vector<16x32xf32> -> vector<16x32xf32>
    %cst_7 = arith.constant 0.000000e+00 : f32
    %8 = vector.broadcast %cst_7 : f32 to vector<16x32xf32>
    %9 = arith.maximumf %7, %8 : vector<16x32xf32>
    %c0_8 = arith.constant 0 : index
    %c0_9 = arith.constant 0 : index
    %10 = vector.load %arg4[%c0_8, %c0_9] : memref<32x1xf32, #tpu.memory_space<vmem>>, vector<32x1xf32>
    %cst_10 = arith.constant dense<0.000000e+00> : vector<16x1xf32>
    %11 = tpu.matmul %9, %10, %cst_10 {dimension_numbers = #tpu.dot_dimension_numbers<[1], [0], [0], [1], [0, 0, 1, 1], [], []>} : vector<16x32xf32>, vector<32x1xf32>, vector<16x1xf32> -> vector<16x1xf32>
    %c0_11 = arith.constant 0 : index
    %c0_12 = arith.constant 0 : index
    %12 = vector.load %arg5[%c0_11, %c0_12] : memref<16x1xf32, #tpu.memory_space<vmem>>, vector<16x1xf32>
    tpu.vector_store %arg5[%c0_11, %c0_12], %11 {strides = array<i32>} : memref<16x1xf32, #tpu.memory_space<vmem>>, vector<16x1xf32>,
    return
  }
  func.func @transform_0(%arg0: i32) -> (i32, i32) {
    %c0_i32 = arith.constant 0 : i32
    %c0_i32_0 = arith.constant 0 : i32
    return %arg0, %c0_i32 : i32, i32
  }
  func.func @transform_1(%arg0: i32) -> (i32, i32) {
    %c0_i32 = arith.constant 0 : i32
    %c0_i32_0 = arith.constant 0 : i32
    %c0_i32_1 = arith.constant 0 : i32
    return %c0_i32, %c0_i32_0 : i32, i32
  }
  func.func @transform_2(%arg0: i32) -> (i32, i32) {
    %c0_i32 = arith.constant 0 : i32
    %c0_i32_0 = arith.constant 0 : i32
    %c0_i32_1 = arith.constant 0 : i32
    return %c0_i32, %c0_i32_0 : i32, i32
  }
  func.func @transform_3(%arg0: i32) -> (i32, i32) {
    %c0_i32 = arith.constant 0 : i32
    %c0_i32_0 = arith.constant 0 : i32
    %c0_i32_1 = arith.constant 0 : i32
    return %c0_i32, %c0_i32_0 : i32, i32
  }
  func.func @transform_4(%arg0: i32) -> (i32, i32) {
    %c0_i32 = arith.constant 0 : i32
    %c0_i32_0 = arith.constant 0 : i32
    return %arg0, %c0_i32 : i32, i32
  }
}

</mosaic_0001>

<bundles_post_ra>
// kernel: tpu_custom_call.1
= control target key start
LH: loop header
LB: loop body
LE: loop exit
PB: predicated region body
PF: predicated region fallthrough
CT: control target
= control target key end

     0   :  { %vm20_vm0 = vcmask 64512   ;;  %vm110_vm1 = vcmask 261120   ;;  %vm279_vm2 = vcmask 7168   ;;  %s414_s1 = inlined_call_operand.vmem [shape: f32[8,32], index: 1, kind: input, shape index: {}]   ;;  %s415_s0 = inlined_call_operand.vmem [shape: f32[16,8], index: 0, kind: input, shape index: {}]   ;;  %s416_s2 = inlined_call_operand.vmem [shape: f32[32,32], index: 2, kind: input, shape index: {}]   ;;  %s417_s3 = inlined_call_operand.vmem [shape: f32[32,1], index: 3, kind: input, shape index: {}]   ;;  %s418_s4 = inlined_call_operand.vmem [shape: f32[16,1], index: 4, kind: output, shape index: {}]  }
   0x1   :  { %v19_v0 = vld [vmem:[%s414_s1] sm:$0xff]  ;;  %v18_v2 = vld [vmem:[%s415_s0 + $0x8] sm:$0xff]  ;;  %v108_v6 = vld [vmem:[%s416_s2 + $0x10] sm:$0xff] }
   0x2   :  { %v17_v1 = vld [vmem:[%s415_s0] sm:$0xff]  ;;  %307 = vmatprep.subr.mxu0 %v19_v0  ;;  %v107_v4 = vld [vmem:[%s416_s2 + $0x8] sm:$0xff]  ;;  %v109_v7 = vld [vmem:[%s416_s2 + $0x18] sm:$0xff] }
   0x3   :  { %309 = vmatprep.mubr.msk.f32.mxu0 %vm20_vm0, %v17_v1  ;;  %v106_v3 = vld [vmem:[%s416_s2] sm:$0xff]  ;;  %308 = vmatpush3.msra.mxu0 %v19_v0  ;;  %v338_v8 = vpack.c.bf16 %v109_v7, %v108_v6  ;;  %v195_v10 = vld [vmem:[%s417_s3 + $0x8] sm:$0xff]  ;;  %v196_v18 = vld [vmem:[%s417_s3 + $0x10] sm:$0xff] }
   0x4   :  { %v334_v5 = vpack.c.bf16 %v107_v4, %v106_v3  ;;  %310 = vmatmul.mubr.msk.f32.vlgmr.msra.gmra.mrb[0].mxu0 %vm20_vm0, %v18_v2  ;;  %v194_v9 = vld [vmem:[%s417_s3] sm:$0xff]  ;;  %v197_v19 = vld [vmem:[%s417_s3 + $0x18] sm:$0xff] }
   0x5   :  { %v342_v11 = vpack.c.bf16 %v195_v10, %v194_v9  ;;  %v346_v20 = vpack.c.bf16 %v197_v19, %v196_v18 }
   0x6   :  { %335 = vmatprep.subr.bf16.mxu1 %v334_v5 }
   0x7   :  { %337 = vmatpush3.bf16.msra.mxu1 %v334_v5  ;;  %343 = vmatprep.subr.bf16.mxu0 %v342_v11 }
   0x8   :  { %339 = vmatprep.subr.bf16.mxu1 %v338_v8  ;;  %345 = vmatpush3.bf16.msra.mxu0 %v342_v11 }
   0x9   :  { %347 = vmatprep.subr.bf16.mxu0 %v346_v20 }
   0xb   :  { %341 = vmatpush3.bf16.msra.mxu1 %v338_v8 }
   0xc   :  { %349 = vmatpush3.bf16.msra.mxu0 %v346_v20 }
  0xd7   :  { %v311_v12 = vpop.f32.mrb[0].mxu0 }
  0xd8   :  { %v103_v13 = vmul.f32 0.5, %v311_v12  ;;  %v93_v14 = vpop.f32.mrb[1].mxu0 }
  0xd9   :  { %v102_v15 = vmul.f32 0.5, %v93_v14 }
  0xda   :  { %v105_v17 = vmul.f32 %v311_v12, %v103_v13 }
  0xdb   :  { %v104_v16 = vmul.f32 %v102_v15, %v93_v14 }
  0xdd   :  { %320 = vmatprep.mubr.msk.f32.mxu1 %vm110_vm1, %v104_v16 }
  0xde   :  { %321 = vmatmul.mubr.msk.f32.vlgmr.msra.gmra.mrb[0].mxu1 %vm110_vm1, %v105_v17 }
 0x1b1   :  { %v322_v21 = vpop.f32.mrb[0].mxu1 }
 0x1b2   :  { %v183_v22 = vpop.f32.mrb[1].mxu1  ;;  %v193_v24 = vmax.f32 %v322_v21, 0.0 }
 0x1b3   :  { %v192_v23 = vmax.f32 %v183_v22, 0.0 }
 0x1b5   :  { %331 = vmatprep.mubr.msk.f32.mxu0 %vm110_vm1, %v192_v23 }
 0x1b6   :  { %332 = vmatmul.mubr.msk.f32.vlgmr.msra.gmra.mrb[2].mxu0 %vm110_vm1, %v193_v24 }
 0x289   :  { %v333_v25 = vpop.f32.mrb[2].mxu0 }
 0x28a   :  { %281 = vst.msk [vmem:[%s418_s4 + $0x8] sm:$0xff] %vm279_vm2, %v333_v25  ;;  %v270_v26 = vpop.f32.mrb[3].mxu0 }
 0x28b   :  { %280 = vst.msk [vmem:[%s418_s4] sm:$0xff] %vm279_vm2, %v270_v26 }

</bundles_post_ra>
